<compile_context>
chip_gen: v5e
topology: v5e:2x2
jax: 0.10.0
libtpu: 0.0.40
codegen_flags: <defaults>
</compile_context>

<pallas_src>
import jax
import jax.numpy as jnp
from jax.experimental import pallas as pl
from jax.experimental.pallas import tpu as pltpu


def _round_up(n, m):
    return ((n + m - 1) // m) * m


def _cdiv(a, b):
    return (a + b - 1) // b


def highway_kernel(x_ref, w_ref, b_ref, o_ref):
    # x_ref: (tile, Dp) in the caller's dtype (f32 or bf16)
    # w_ref: (Dp, 2*Dp) bf16, resident     b_ref: (1, 2*Dp) f32
    x = x_ref[...]
    dp = x_ref.shape[1]

    # One fused MXU matmul for both branches, bf16 operands, f32 accumulation.
    xm = x.astype(w_ref.dtype)
    y = jnp.dot(xm, w_ref[...], preferred_element_type=jnp.float32) + b_ref[...]

    proj = jnp.maximum(y[:, :dp], 0.0)                           # relu (VPU)
    # sigmoid via EUP-only ops: exp + approximate reciprocal.
    gate = pl.reciprocal(1.0 + jnp.exp(-y[:, dp:]), approx=True)

    # Residual path at the input's full precision.
    xf = x.astype(jnp.float32)
    # gate*proj + (1-gate)*x  ==  x + gate*(proj - x)
    o_ref[...] = (xf + gate * (proj - xf)).astype(o_ref.dtype)


def highway_reference(x, w_proj, b_proj, w_gate, b_gate):
    proj = jnp.maximum(x @ w_proj + b_proj, 0.0)
    gate = jax.nn.sigmoid(x @ w_gate + b_gate)
    return gate * proj + (1.0 - gate) * x


def highway_forward(x, w_proj, b_proj, w_gate, b_gate, *,
                    batch_tile=None, out_dtype=None,
                    force_pallas=False, min_pallas_elements=100_000):
    """x: (B, D). w_*: (D, D) laid out for x @ W (PyTorch weight.T). b_*: (D,)."""
    B, D = x.shape
    out_dtype = x.dtype if out_dtype is None else out_dtype

    # Small-shape fallback: at tiny sizes a fused XLA dot+elementwise beats
    # kernel dispatch / pipelining overhead.
    if not force_pallas and B * D < min_pallas_elements:
        return highway_reference(x, w_proj, b_proj, w_gate, b_gate).astype(out_dtype)

    mxu_dtype = jnp.bfloat16
    Dp = _round_up(D, 128)          # lane-dense feature dim

    if Dp == D:
        # Aligned case: no padding passes at all.
        x_p = x
        w_cat = jnp.concatenate([w_proj, w_gate], axis=1).astype(mxu_dtype)
        b_cat = jnp.concatenate([b_proj, b_gate])[None, :].astype(jnp.float32)
    else:
        # Pad directly in the final dtypes (no f32 intermediates).
        x_p = jnp.zeros((B, Dp), x.dtype).at[:, :D].set(x)
        w_cat = jnp.zeros((Dp, 2 * Dp), mxu_dtype)
        w_cat = w_cat.at[:D, :D].set(w_proj.astype(mxu_dtype))
        w_cat = w_cat.at[:D, Dp:Dp + D].set(w_gate.astype(mxu_dtype))
        b_cat = jnp.zeros((1, 2 * Dp), jnp.float32)
        b_cat = b_cat.at[0, :D].set(b_proj.astype(jnp.float32))
        b_cat = b_cat.at[0, Dp:Dp + D].set(b_gate.astype(jnp.float32))

    x_bytes = jnp.dtype(x.dtype).itemsize
    o_bytes = jnp.dtype(out_dtype).itemsize

    # Generation-aware VMEM budget: ~0.8 of physical capacity
    # (~102 MiB v5e/v6e, ~51 MiB v7x); conservative 64 MiB if query fails.
    try:
        vmem_cap = int(pltpu.get_tpu_info().vmem_capacity_bytes)
    except Exception:
        vmem_cap = 64 * 1024 * 1024
    vmem_limit = int(0.8 * vmem_cap)

    # Per-grid-step VMEM footprint model (weights conservatively counted
    # double-buffered in case the single-buffer request is rejected).
    resident = 2 * (Dp * 2 * Dp * 2 + 2 * Dp * 4)
    per_row = (2 * Dp * x_bytes        # x tile (double-buffered)
               + 2 * Dp * o_bytes      # out tile (double-buffered)
               + 2 * Dp * 4            # f32 y intermediate
               + 3 * Dp * 4)           # proj / gate / residual temporaries

    if batch_tile is None:
        avail = max(vmem_limit - resident, per_row * 16)
        bt = min(int(avail // per_row), 2048)
        # Keep >=4-8 grid steps (pipelining / dual-TC sharding) while tiles
        # stay >= 256 rows.
        if B >= 8 * 256:
            bt = min(bt, max(256, _round_up(_cdiv(B, 8), 16)))
        elif B >= 4 * 256:
            bt = min(bt, max(256, _round_up(_cdiv(B, 4), 16)))
        bt = min(bt, B)
        batch_tile = max(16, (bt // 16) * 16)
    batch_tile = max(16, _round_up(batch_tile, 16))

    grid = (pl.cdiv(B, batch_tile),)

    cost = pl.CostEstimate(
        flops=2 * B * Dp * (2 * Dp) + 6 * B * Dp,
        transcendentals=B * Dp,
        bytes_accessed=(B * Dp * x_bytes + B * Dp * o_bytes
                        + Dp * 2 * Dp * 2 + 2 * Dp * 4),
    )

    def _call(single_buffer_weights):
        resident_kw = (dict(pipeline_mode=pl.Buffered(1))
                       if single_buffer_weights else {})
        grid_spec = pltpu.PrefetchScalarGridSpec(
            num_scalar_prefetch=0,
            grid=grid,
            in_specs=[
                pl.BlockSpec((batch_tile, Dp), lambda i: (i, 0)),          # x tile
                pl.BlockSpec((Dp, 2 * Dp), lambda i: (0, 0), **resident_kw),  # fused W
                pl.BlockSpec((1, 2 * Dp), lambda i: (0, 0), **resident_kw),   # fused b
            ],
            out_specs=pl.BlockSpec((batch_tile, Dp), lambda i: (i, 0)),
        )
        return pl.pallas_call(
            highway_kernel,
            out_shape=jax.ShapeDtypeStruct((B, Dp), out_dtype),
            grid_spec=grid_spec,
            compiler_params=pltpu.CompilerParams(
                dimension_semantics=("parallel",),
                vmem_limit_bytes=vmem_limit,
            ),
            cost_estimate=cost,
        )(x_p, w_cat, b_cat)

    try:
        out = _call(True)
    except Exception:
        # pipeline_mode / Buffered(1) not supported -> default double-buffering.
        out = _call(False)

    return out if Dp == D else out[:, :D]


def _make_params(key, D):
    kwp, kbp, kwg, kbg = jax.random.split(key, 4)
    bound = 1.0 / (D ** 0.5)
    w_proj = jax.random.uniform(kwp, (D, D), minval=-bound, maxval=bound,
                                dtype=jnp.float32)
    b_proj = jax.random.uniform(kbp, (D,), minval=-bound, maxval=bound,
                                dtype=jnp.float32)
    w_gate = jax.random.uniform(kwg, (D, D), minval=-bound, maxval=bound,
                                dtype=jnp.float32)
    b_gate = jax.random.uniform(kbg, (D,), minval=-bound, maxval=bound,
                                dtype=jnp.float32)
    return w_proj, b_proj, w_gate, b_gate


if __name__ == "__main__":
    key = jax.random.PRNGKey(0)
    k1, k2, kx1, kx2 = jax.random.split(key, 4)

    # Case 1: module-scale shape (batch_size, e_word) with unaligned D
    # (exercises the lane-padding path).
    B1, D1 = 8, 32
    x1 = jax.random.normal(kx1, (B1, D1), dtype=jnp.float32)
    p1 = _make_params(k1, D1)
    out1 = jax.block_until_ready(highway_forward(x1, *p1, force_pallas=True))
    ref1 = highway_reference(x1, *p1)
    assert out1.shape == (B1, D1)
    assert jnp.allclose(out1, ref1, atol=2e-2, rtol=2e-2), "mismatch (case 1)"

    # Case 2: 128-aligned D with a ragged batch (exercises the unpadded path
    # + pl.cdiv boundary block handling).
    B2, D2 = 100, 256
    x2 = jax.random.normal(kx2, (B2, D2), dtype=jnp.float32)
    p2 = _make_params(k2, D2)
    out2 = jax.block_until_ready(highway_forward(x2, *p2, force_pallas=True))
    ref2 = highway_reference(x2, *p2)
    assert out2.shape == (B2, D2)
    assert jnp.allclose(out2, ref2, atol=2e-2, rtol=2e-2), "mismatch (case 2)"

    print("KERNEL_OK")
</pallas_src>

<mosaic_0001>
module attributes {stable_mosaic.version = 11 : i64} {
  func.func @highway_kernel(%arg0: i32, %arg1: memref<16x128xf32, #tpu.memory_space<vmem>>, %arg2: memref<128x256xbf16, #tpu.memory_space<vmem>>, %arg3: memref<1x256xf32, #tpu.memory_space<vmem>>, %arg4: memref<16x128xf32, #tpu.memory_space<vmem>>) attributes {dimension_semantics = [#tpu.dimension_semantics<parallel>], iteration_bounds = array<i64: 1>, scalar_prefetch = 0 : i64, scratch_operands = 0 : i64, tpu.core_type = #tpu.core_type<tc>, window_params = [{transform_indices = @transform_0, window_bounds = array<i64: 16, 128>}, {pipeline_mode = #tpu.pipeline_mode<synchronous>, transform_indices = @transform_1, window_bounds = array<i64: 128, 256>}, {pipeline_mode = #tpu.pipeline_mode<synchronous>, transform_indices = @transform_2, window_bounds = array<i64: 1, 256>}, {transform_indices = @transform_3, window_bounds = array<i64: 16, 128>}]} {
    %c0 = arith.constant 0 : index
    %c0_0 = arith.constant 0 : index
    %0 = vector.load %arg1[%c0, %c0_0] : memref<16x128xf32, #tpu.memory_space<vmem>>, vector<16x128xf32>
    %1 = arith.truncf %0 : vector<16x128xf32> to vector<16x128xbf16>
    %c0_1 = arith.constant 0 : index
    %c0_2 = arith.constant 0 : index
    %2 = vector.load %arg2[%c0_1, %c0_2] : memref<128x256xbf16, #tpu.memory_space<vmem>>, vector<128x256xbf16>
    %cst = arith.constant dense<0.000000e+00> : vector<16x256xf32>
    %3 = tpu.matmul %1, %2, %cst {dimension_numbers = #tpu.dot_dimension_numbers<[1], [0], [0], [1], [0, 0, 1, 1], [], []>} : vector<16x128xbf16>, vector<128x256xbf16>, vector<16x256xf32> -> vector<16x256xf32>
    %c0_3 = arith.constant 0 : index
    %c0_4 = arith.constant 0 : index
    %4 = vector.load %arg3[%c0_3, %c0_4] : memref<1x256xf32, #tpu.memory_space<vmem>>, vector<1x256xf32>
    %5 = vector.broadcast %4 : vector<1x256xf32> to vector<16x256xf32>
    %6 = arith.addf %3, %5 : vector<16x256xf32>
    %7 = vector.extract_strided_slice %6 {offsets = [0, 0], sizes = [16, 128], strides = [1, 1]} : vector<16x256xf32> to vector<16x128xf32>
    %cst_5 = arith.constant 0.000000e+00 : f32
    %8 = vector.broadcast %cst_5 : f32 to vector<16x128xf32>
    %9 = arith.maximumf %7, %8 : vector<16x128xf32>
    %10 = vector.extract_strided_slice %6 {offsets = [0, 128], sizes = [16, 128], strides = [1, 1]} : vector<16x256xf32> to vector<16x128xf32>
    %cst_6 = arith.constant 0.000000e+00 : f32
    %11 = vector.broadcast %cst_6 : f32 to vector<16x128xf32>
    %12 = arith.subf %11, %10 : vector<16x128xf32>
    %13 = math.exp %12 : vector<16x128xf32>
    %cst_7 = arith.constant 1.000000e+00 : f32
    %14 = vector.broadcast %cst_7 : f32 to vector<16x128xf32>
    %15 = arith.addf %14, %13 : vector<16x128xf32>
    %16 = tpu.reciprocal %15 {approx = true} : vector<16x128xf32> -> vector<16x128xf32>
    %17 = arith.subf %9, %0 : vector<16x128xf32>
    %18 = arith.mulf %16, %17 : vector<16x128xf32>
    %19 = arith.addf %0, %18 : vector<16x128xf32>
    %c0_8 = arith.constant 0 : index
    %c0_9 = arith.constant 0 : index
    %20 = vector.load %arg4[%c0_8, %c0_9] : memref<16x128xf32, #tpu.memory_space<vmem>>, vector<16x128xf32>
    tpu.vector_store %arg4[%c0_8, %c0_9], %19 {strides = array<i32>} : memref<16x128xf32, #tpu.memory_space<vmem>>, vector<16x128xf32>,
    return
  }
  func.func @transform_0(%arg0: i32) -> (i32, i32) {
    %c0_i32 = arith.constant 0 : i32
    %c0_i32_0 = arith.constant 0 : i32
    return %arg0, %c0_i32 : i32, i32
  }
  func.func @transform_1(%arg0: i32) -> (i32, i32) {
    %c0_i32 = arith.constant 0 : i32
    %c0_i32_0 = arith.constant 0 : i32
    %c0_i32_1 = arith.constant 0 : i32
    return %c0_i32, %c0_i32_0 : i32, i32
  }
  func.func @transform_2(%arg0: i32) -> (i32, i32) {
    %c0_i32 = arith.constant 0 : i32
    %c0_i32_0 = arith.constant 0 : i32
    %c0_i32_1 = arith.constant 0 : i32
    return %c0_i32, %c0_i32_0 : i32, i32
  }
  func.func @transform_3(%arg0: i32) -> (i32, i32) {
    %c0_i32 = arith.constant 0 : i32
    %c0_i32_0 = arith.constant 0 : i32
    return %arg0, %c0_i32 : i32, i32
  }
}

module attributes {stable_mosaic.version = 11 : i64} {
  func.func @highway_kernel(%arg0: i32, %arg1: memref<16x128xf32, #tpu.memory_space<vmem>>, %arg2: memref<128x256xbf16, #tpu.memory_space<vmem>>, %arg3: memref<1x256xf32, #tpu.memory_space<vmem>>, %arg4: memref<16x128xf32, #tpu.memory_space<vmem>>) attributes {dimension_semantics = [#tpu.dimension_semantics<parallel>], iteration_bounds = array<i64: 1>, scalar_prefetch = 0 : i64, scratch_operands = 0 : i64, tpu.core_type = #tpu.core_type<tc>, window_params = [{transform_indices = @transform_0, window_bounds = array<i64: 16, 128>}, {pipeline_mode = #tpu.pipeline_mode<synchronous>, transform_indices = @transform_1, window_bounds = array<i64: 128, 256>}, {pipeline_mode = #tpu.pipeline_mode<synchronous>, transform_indices = @transform_2, window_bounds = array<i64: 1, 256>}, {transform_indices = @transform_3, window_bounds = array<i64: 16, 128>}]} {
    %c0 = arith.constant 0 : index
    %c0_0 = arith.constant 0 : index
    %0 = vector.load %arg1[%c0, %c0_0] : memref<16x128xf32, #tpu.memory_space<vmem>>, vector<16x128xf32>
    %1 = arith.truncf %0 : vector<16x128xf32> to vector<16x128xbf16>
    %c0_1 = arith.constant 0 : index
    %c0_2 = arith.constant 0 : index
    %2 = vector.load %arg2[%c0_1, %c0_2] : memref<128x256xbf16, #tpu.memory_space<vmem>>, vector<128x256xbf16>
    %cst = arith.constant dense<0.000000e+00> : vector<16x256xf32>
    %3 = tpu.matmul %1, %2, %cst {dimension_numbers = #tpu.dot_dimension_numbers<[1], [0], [0], [1], [0, 0, 1, 1], [], []>} : vector<16x128xbf16>, vector<128x256xbf16>, vector<16x256xf32> -> vector<16x256xf32>
    %c0_3 = arith.constant 0 : index
    %c0_4 = arith.constant 0 : index
    %4 = vector.load %arg3[%c0_3, %c0_4] : memref<1x256xf32, #tpu.memory_space<vmem>>, vector<1x256xf32>
    %5 = vector.broadcast %4 : vector<1x256xf32> to vector<16x256xf32>
    %6 = arith.addf %3, %5 : vector<16x256xf32>
    %7 = vector.extract_strided_slice %6 {offsets = [0, 0], sizes = [16, 128], strides = [1, 1]} : vector<16x256xf32> to vector<16x128xf32>
    %cst_5 = arith.constant 0.000000e+00 : f32
    %8 = vector.broadcast %cst_5 : f32 to vector<16x128xf32>
    %9 = arith.maximumf %7, %8 : vector<16x128xf32>
    %10 = vector.extract_strided_slice %6 {offsets = [0, 128], sizes = [16, 128], strides = [1, 1]} : vector<16x256xf32> to vector<16x128xf32>
    %cst_6 = arith.constant 0.000000e+00 : f32
    %11 = vector.broadcast %cst_6 : f32 to vector<16x128xf32>
    %12 = arith.subf %11, %10 : vector<16x128xf32>
    %13 = math.exp %12 : vector<16x128xf32>
    %cst_7 = arith.constant 1.000000e+00 : f32
    %14 = vector.broadcast %cst_7 : f32 to vector<16x128xf32>
    %15 = arith.addf %14, %13 : vector<16x128xf32>
    %16 = tpu.reciprocal %15 {approx = true} : vector<16x128xf32> -> vector<16x128xf32>
    %17 = arith.subf %9, %0 : vector<16x128xf32>
    %18 = arith.mulf %16, %17 : vector<16x128xf32>
    %19 = arith.addf %0, %18 : vector<16x128xf32>
    %c0_8 = arith.constant 0 : index
    %c0_9 = arith.constant 0 : index
    %20 = vector.load %arg4[%c0_8, %c0_9] : memref<16x128xf32, #tpu.memory_space<vmem>>, vector<16x128xf32>
    tpu.vector_store %arg4[%c0_8, %c0_9], %19 {strides = array<i32>} : memref<16x128xf32, #tpu.memory_space<vmem>>, vector<16x128xf32>,
    return
  }
  func.func @transform_0(%arg0: i32) -> (i32, i32) {
    %c0_i32 = arith.constant 0 : i32
    %c0_i32_0 = arith.constant 0 : i32
    return %arg0, %c0_i32 : i32, i32
  }
  func.func @transform_1(%arg0: i32) -> (i32, i32) {
    %c0_i32 = arith.constant 0 : i32
    %c0_i32_0 = arith.constant 0 : i32
    %c0_i32_1 = arith.constant 0 : i32
    return %c0_i32, %c0_i32_0 : i32, i32
  }
  func.func @transform_2(%arg0: i32) -> (i32, i32) {
    %c0_i32 = arith.constant 0 : i32
    %c0_i32_0 = arith.constant 0 : i32
    %c0_i32_1 = arith.constant 0 : i32
    return %c0_i32, %c0_i32_0 : i32, i32
  }
  func.func @transform_3(%arg0: i32) -> (i32, i32) {
    %c0_i32 = arith.constant 0 : i32
    %c0_i32_0 = arith.constant 0 : i32
    return %arg0, %c0_i32 : i32, i32
  }
}

</mosaic_0001>

<bundles_post_ra>
// kernel: tpu_custom_call.1
= control target key start
LH: loop header
LB: loop body
LE: loop exit
PB: predicated region body
PF: predicated region fallthrough
CT: control target
= control target key end

     0   :  { %8 = vsyncpa [#allocation3], 0  ;;  %s476_s0 = inlined_call_operand.hbm [shape: f32[8,128], index: 0, kind: input, shape index: {}]   ;;  %s477_s1 = inlined_call_operand.hbm [shape: bf16[128,256], index: 1, kind: input, shape index: {}]   ;;  %s478_s2 = inlined_call_operand.hbm [shape: f32[1,256], index: 2, kind: input, shape index: {}]   ;;  %s479_s3 = inlined_call_operand.hbm [shape: f32[8,128], index: 3, kind: output, shape index: {}]  }
   0x1   :  { %9 = vsyncpa [#allocation6], 0 }
   0x2   :  { %10 = vsyncpa [#allocation4], 0 }
   0x3   :  { %14 = vsyncadd [#allocation3], 128  ;;  %s28_s14 = sshll.u32 %s477_s1, 4  ;;  %s429_s15 = smov [#allocation5]   ;;  %s29_s14 = int_to_ptr.hbm [resolvable:$true] %s28_s14 }
   0x4   :  { %s30_s16 = sshll.u32 %s429_s15, 4  ;;  %s15_s19 = sshll.u32 %s476_s0, 4  ;;  %s31_s16 = int_to_ptr.vmem [resolvable:$true] %s30_s16  ;;  %s16_s19 = int_to_ptr.hbm [resolvable:$true] %s15_s19 }
   0x5   :  { %s430_s20 = smov 128   ;;  %s431_s21 = smov 8  }
   0x6   :  { %36 = dma.hbm_to_vmem [thread:$0]  %s29_s14, 2048, %s31_s16, [#allocation6], %s430_s20, %s430_s20, %s431_s21  }
   0x7   :  { %s432_s22 = smov [#allocation2]   ;;  %s42_s1 = sshll.u32 %s478_s2, 4  ;;  %s43_s1 = int_to_ptr.hbm [resolvable:$true] %s42_s1 }
   0x8   :  { %s17_s23 = sshll.u32 %s432_s22, 4  ;;  %s433_s0 = smov [#allocation7]   ;;  %s18_s23 = int_to_ptr.vmem [resolvable:$true] %s17_s23 }
   0x9   :  { %23 = dma.hbm_to_vmem [thread:$0]  %s16_s19, 128, %s18_s23, [#allocation3], %s430_s20, %s430_s20, %s431_s21  }
   0xa   :  { %s44_s26 = sshll.u32 %s433_s0, 4  ;;  %s45_s26 = int_to_ptr.vmem [resolvable:$true] %s44_s26 }
   0xb   :  { %47 = dma.hbm_to_vmem [thread:$0]  %s43_s1, 32, %s45_s26, [#allocation6]  }
   0xc   :  { %423 = dma.done.wait [#allocation3], 256  }
   0xd   :  { %424 = vsyncadd [#allocation3], 4294967040 }
   0xe   :  { %425 = dma.done.wait [#allocation6], 2080  }
   0xf   :  { %426 = vsyncadd [#allocation6], 4294965216  ;;  %v311_v0 = vld [vmem:[#allocation5 + $0x74] sm:$0xf]  ;;  %v293_v1 = vld [vmem:[#allocation5 + $0x78] sm:$0xf0] }
  0x10   :  { %v309_v2 = vld [vmem:[#allocation5 + $0x64] sm:$0xf]  ;;  %v296_v3 = vor.u32 %v311_v0, %v293_v1  ;;  %v285_v4 = vld [vmem:[#allocation5 + $0x68] sm:$0xf0]  ;;  %v291_v5 = vld [vmem:[#allocation5 + $0x70] sm:$0xf] }
  0x11   :  { %v312_v6 = vld [vmem:[#allocation5 + $0x74] sm:$0xf0]  ;;  %v283_v8 = vld [vmem:[#allocation5 + $0x60] sm:$0xf]  ;;  %v288_v9 = vor.u32 %v309_v2, %v285_v4  ;;  %v310_v10 = vld [vmem:[#allocation5 + $0x64] sm:$0xf0] }
  0x12   :  { %v292_v7 = vor.u32 %v312_v6, %v291_v5  ;;  %179 = vmatpush.bf16.msra.mxu1 %v296_v3  ;;  %v307_v11 = vld [vmem:[#allocation5 + $0x54] sm:$0xf]  ;;  %v277_v12 = vld [vmem:[#allocation5 + $0x58] sm:$0xf0]  ;;  %v284_v13 = vor.u32 %v310_v10, %v283_v8  ;;  %v275_v14 = vld [vmem:[#allocation5 + $0x50] sm:$0xf] }
  0x13   :  { %v308_v15 = vld [vmem:[#allocation5 + $0x54] sm:$0xf0]  ;;  %v280_v16 = vor.u32 %v307_v11, %v277_v12  ;;  %v305_v17 = vld [vmem:[#allocation5 + $0x44] sm:$0xf]  ;;  %v269_v18 = vld [vmem:[#allocation5 + $0x48] sm:$0xf0] }
  0x14   :  { %165 = vmatpush.bf16.msra.mxu0 %v292_v7  ;;  %v276_v19 = vor.u32 %v308_v15, %v275_v14  ;;  %v267_v20 = vld [vmem:[#allocation5 + $0x40] sm:$0xf]  ;;  %v306_v21 = vld [vmem:[#allocation5 + $0x44] sm:$0xf0]  ;;  %v272_v22 = vor.u32 %v305_v17, %v269_v18  ;;  %v303_v23 = vld [vmem:[#allocation5 + $0x34] sm:$0xf] }
  0x15   :  { %v261_v24 = vld [vmem:[#allocation5 + $0x38] sm:$0xf0]  ;;  %v268_v25 = vor.u32 %v306_v21, %v267_v20  ;;  %v259_v26 = vld [vmem:[#allocation5 + $0x30] sm:$0xf]  ;;  %v304_v27 = vld [vmem:[#allocation5 + $0x34] sm:$0xf0] }
  0x16   :  { %180 = vmatpush.bf16.msra.mxu1 %v288_v9  ;;  %v264_v28 = vor.u32 %v303_v23, %v261_v24  ;;  %v301_v29 = vld [vmem:[#allocation5 + $0x24] sm:$0xf]  ;;  %v253_v30 = vld [vmem:[#allocation5 + $0x28] sm:$0xf0]  ;;  %v260_v31 = vor.u32 %v304_v27, %v259_v26  ;;  %v251_v32 = vld [vmem:[#allocation5 + $0x20] sm:$0xf] }
  0x17   :  { %v302_v33 = vld [vmem:[#allocation5 + $0x24] sm:$0xf0]  ;;  %v256_v34 = vor.u32 %v301_v29, %v253_v30  ;;  %v299_v35 = vld [vmem:[#allocation5 + $0x14] sm:$0xf]  ;;  %v245_v36 = vld [vmem:[#allocation5 + $0x18] sm:$0xf0] }
  0x18   :  { %166 = vmatpush.bf16.msra.mxu0 %v284_v13  ;;  %v252_v37 = vor.u32 %v302_v33, %v251_v32  ;;  %v243_v38 = vld [vmem:[#allocation5 + $0x10] sm:$0xf]  ;;  %v300_v39 = vld [vmem:[#allocation5 + $0x14] sm:$0xf0]  ;;  %v248_v40 = vor.u32 %v299_v35, %v245_v36  ;;  %v297_v41 = vld [vmem:[#allocation5 + $0x4] sm:$0xf] }
  0x19   :  { %v237_v42 = vld [vmem:[#allocation5 + $0x8] sm:$0xf0]  ;;  %v244_v43 = vor.u32 %v300_v39, %v243_v38  ;;  %v235_v44 = vld [vmem:[#allocation5] sm:$0xf]  ;;  %v298_v45 = vld [vmem:[#allocation5 + $0x4] sm:$0xf0] }
  0x1a   :  { %181 = vmatpush.bf16.msra.mxu1 %v280_v16  ;;  %v240_v46 = vor.u32 %v297_v41, %v237_v42  ;;  %v60_v47 = vld [vmem:[#allocation2] sm:$0xff]  ;;  %v61_v48 = vld [vmem:[#allocation2 + $0x8] sm:$0xff]  ;;  %v236_v49 = vor.u32 %v298_v45, %v235_v44  ;;  %v79_v51 = vld [vmem:[#allocation7] sm:$0x3] }
  0x1b   :  { %v62_v50 = vpack.c.bf16 %v61_v48, %v60_v47  ;;  %v82_v52 = vperm.slane %v79_v51, 1  ;;  %v81_v57 = vperm.slane %v79_v51, 0 }
  0x1c   :  { %167 = vmatpush.bf16.msra.mxu0 %v276_v19 }
  0x1e   :  { %182 = vmatpush.bf16.msra.mxu1 %v272_v22 }
  0x20   :  { %168 = vmatpush.bf16.msra.mxu0 %v268_v25 }
  0x22   :  { %183 = vmatpush.bf16.msra.mxu1 %v264_v28 }
  0x24   :  { %169 = vmatpush.bf16.msra.mxu0 %v260_v31 }
  0x26   :  { %184 = vmatpush.bf16.msra.mxu1 %v256_v34 }
  0x28   :  { %170 = vmatpush.bf16.msra.mxu0 %v252_v37 }
  0x2a   :  { %185 = vmatpush.bf16.msra.mxu1 %v248_v40 }
  0x2c   :  { %171 = vmatpush.bf16.msra.mxu0 %v244_v43 }
  0x2e   :  { %186 = vmatpush.bf16.msra.mxu1 %v240_v46 }
  0x30   :  { %172 = vmatpush.bf16.msra.mxu0 %v236_v49 }
  0x31   :  { %187 = vmatmul.bf16.vlgmr.msra.gmra.mxu1 %v62_v50 }
  0x33   :  { %173 = vmatmul.bf16.vlgmr.msra.gmra.mxu0 %v62_v50 }
  0xae   :  { %v188_v53 = vpop.f32.mrf.mxu1 }
  0xaf   :  { %v189_v54 = vadd.f32 %v188_v53, %v82_v52 }
  0xb0   :  { %v174_v58 = vpop.f32.mrf.mxu0 }
  0xb1   :  { %v195_v55 = vsub.f32 0.0, %v189_v54  ;;  %v175_v61 = vadd.f32 %v174_v58, %v81_v57 }
  0xb3   :  { %v197_v56 = vmul.f32 1.442695, %v195_v55  ;;  %v193_v2 = vmax.f32 %v175_v61, 0.0 }
  0xb5   :  { %319 = vpow2.f32 %v197_v56  ;;  %v205_v4 = vsub.f32 %v193_v2, %v60_v47 }
  0xb6   :  { %v190_v59 = vpop.f32.mrf.mxu1 }
  0xb7   :  { %v191_v60 = vadd.f32 %v190_v59, %v82_v52 }
  0xb8   :  { %v176_v3 = vpop.f32.mrf.mxu0 }
  0xb9   :  { %v196_v62 = vsub.f32 0.0, %v191_v60  ;;  %v177_v6 = vadd.f32 %v176_v3, %v81_v57 }
  0xbb   :  { %v320_v63 = vpop.eup %319  ;;  %v199_v0 = vmul.f32 1.442695, %v196_v62  ;;  %v194_v11 = vmax.f32 %v177_v6, 0.0 }
  0xbc   :  { %v201_v1 = vadd.f32 1.0, %v320_v63 }
  0xbd   :  { %321 = vpow2.f32 %v199_v0  ;;  %v206_v12 = vsub.f32 %v194_v11, %v61_v48 }
  0xbe   :  { %323 = vrcp.f32 %v201_v1 }
  0xc3   :  { %v322_v5 = vpop.eup %321 }
  0xc4   :  { %v324_v7 = vpop.eup %323  ;;  %v202_v8 = vadd.f32 1.0, %v322_v5 }
  0xc5   :  { %v207_v9 = vmul.f32 %v324_v7, %v205_v4 }
  0xc6   :  { %325 = vrcp.f32 %v202_v8 }
  0xc7   :  { %v209_v10 = vadd.f32 %v207_v9, %v60_v47 }
  0xc9   :  { %211 = vst [vmem:[#allocation8] sm:$0xff] %v209_v10 }
  0xcc   :  { %v326_v13 = vpop.eup %325 }
  0xcd   :  { %v208_v14 = vmul.f32 %v326_v13, %v206_v12 }
  0xcf   :  { %v210_v15 = vadd.f32 %v208_v14, %v61_v48 }
  0xd1   :  { %212 = vst [vmem:[#allocation8 + $0x8] sm:$0xff] %v210_v15 }
  0xd2   :  { %216 = vsyncadd [#allocation4], 128  ;;  %s219_s28 = sshll.u32 %s479_s3, 4  ;;  %s434_s29 = smov [#allocation8]   ;;  %s220_s28 = int_to_ptr.hbm [resolvable:$true] %s219_s28 }
  0xd3   :  { %s217_s30 = sshll.u32 %s434_s29, 4  ;;  %s218_s30 = int_to_ptr.vmem [resolvable:$true] %s217_s30 }
  0xd4   :  { %225 = dma.vmem_to_hbm [thread:$0]  %s218_s30, 128, %s220_s28, [#allocation4], %s430_s20, %s430_s20, %s431_s21  }
  0xd5   :  { %427 = dma.done.wait [#allocation4], 256  }
  0xd6   :  { %428 = vsyncadd [#allocation4], 4294967040 }
  0xd7   :  { %230 = vsyncpa [#allocation3], 1 }
  0xd8   :  { %231 = vsyncpa [#allocation6], 1 }
  0xd9   :  { %232 = vsyncpa [#allocation4], 1 }

// kernel: tpu_custom_call.1
= control target key start
LH: loop header
LB: loop body
LE: loop exit
PB: predicated region body
PF: predicated region fallthrough
CT: control target
= control target key end

     0   :  { %8 = vsyncpa [#allocation3], 0  ;;  %s476_s0 = inlined_call_operand.hbm [shape: f32[8,128], index: 0, kind: input, shape index: {}]   ;;  %s477_s1 = inlined_call_operand.hbm [shape: bf16[128,256], index: 1, kind: input, shape index: {}]   ;;  %s478_s2 = inlined_call_operand.hbm [shape: f32[1,256], index: 2, kind: input, shape index: {}]   ;;  %s479_s3 = inlined_call_operand.hbm [shape: f32[8,128], index: 3, kind: output, shape index: {}]  }
   0x1   :  { %9 = vsyncpa [#allocation6], 0 }
   0x2   :  { %10 = vsyncpa [#allocation4], 0 }
   0x3   :  { %14 = vsyncadd [#allocation3], 128  ;;  %s28_s14 = sshll.u32 %s477_s1, 4  ;;  %s429_s15 = smov [#allocation5]   ;;  %s29_s14 = int_to_ptr.hbm [resolvable:$true] %s28_s14 }
   0x4   :  { %s30_s16 = sshll.u32 %s429_s15, 4  ;;  %s15_s19 = sshll.u32 %s476_s0, 4  ;;  %s31_s16 = int_to_ptr.vmem [resolvable:$true] %s30_s16  ;;  %s16_s19 = int_to_ptr.hbm [resolvable:$true] %s15_s19 }
   0x5   :  { %s430_s20 = smov 128   ;;  %s431_s21 = smov 8  }
   0x6   :  { %36 = dma.hbm_to_vmem [thread:$0]  %s29_s14, 2048, %s31_s16, [#allocation6], %s430_s20, %s430_s20, %s431_s21  }
   0x7   :  { %s432_s22 = smov [#allocation2]   ;;  %s42_s1 = sshll.u32 %s478_s2, 4  ;;  %s43_s1 = int_to_ptr.hbm [resolvable:$true] %s42_s1 }
   0x8   :  { %s17_s23 = sshll.u32 %s432_s22, 4  ;;  %s433_s0 = smov [#allocation7]   ;;  %s18_s23 = int_to_ptr.vmem [resolvable:$true] %s17_s23 }
   0x9   :  { %23 = dma.hbm_to_vmem [thread:$0]  %s16_s19, 128, %s18_s23, [#allocation3], %s430_s20, %s430_s20, %s431_s21  }
   0xa   :  { %s44_s26 = sshll.u32 %s433_s0, 4  ;;  %s45_s26 = int_to_ptr.vmem [resolvable:$true] %s44_s26 }
   0xb   :  { %47 = dma.hbm_to_vmem [thread:$0]  %s43_s1, 32, %s45_s26, [#allocation6]  }
   0xc   :  { %423 = dma.done.wait [#allocation3], 256  }
   0xd   :  { %424 = vsyncadd [#allocation3], 4294967040 }
   0xe   :  { %425 = dma.done.wait [#allocation6], 2080  }
   0xf   :  { %426 = vsyncadd [#allocation6], 4294965216  ;;  %v311_v0 = vld [vmem:[#allocation5 + $0x74] sm:$0xf]  ;;  %v293_v1 = vld [vmem:[#allocation5 + $0x78] sm:$0xf0] }
  0x10   :  { %v309_v2 = vld [vmem:[#allocation5 + $0x64] sm:$0xf]  ;;  %v296_v3 = vor.u32 %v311_v0, %v293_v1  ;;  %v285_v4 = vld [vmem:[#allocation5 + $0x68] sm:$0xf0]  ;;  %v291_v5 = vld [vmem:[#allocation5 + $0x70] sm:$0xf] }
  0x11   :  { %v312_v6 = vld [vmem:[#allocation5 + $0x74] sm:$0xf0]  ;;  %v283_v8 = vld [vmem:[#allocation5 + $0x60] sm:$0xf]  ;;  %v288_v9 = vor.u32 %v309_v2, %v285_v4  ;;  %v310_v10 = vld [vmem:[#allocation5 + $0x64] sm:$0xf0] }
  0x12   :  { %v292_v7 = vor.u32 %v312_v6, %v291_v5  ;;  %179 = vmatpush.bf16.msra.mxu1 %v296_v3  ;;  %v307_v11 = vld [vmem:[#allocation5 + $0x54] sm:$0xf]  ;;  %v277_v12 = vld [vmem:[#allocation5 + $0x58] sm:$0xf0]  ;;  %v284_v13 = vor.u32 %v310_v10, %v283_v8  ;;  %v275_v14 = vld [vmem:[#allocation5 + $0x50] sm:$0xf] }
  0x13   :  { %v308_v15 = vld [vmem:[#allocation5 + $0x54] sm:$0xf0]  ;;  %v280_v16 = vor.u32 %v307_v11, %v277_v12  ;;  %v305_v17 = vld [vmem:[#allocation5 + $0x44] sm:$0xf]  ;;  %v269_v18 = vld [vmem:[#allocation5 + $0x48] sm:$0xf0] }
  0x14   :  { %165 = vmatpush.bf16.msra.mxu0 %v292_v7  ;;  %v276_v19 = vor.u32 %v308_v15, %v275_v14  ;;  %v267_v20 = vld [vmem:[#allocation5 + $0x40] sm:$0xf]  ;;  %v306_v21 = vld [vmem:[#allocation5 + $0x44] sm:$0xf0]  ;;  %v272_v22 = vor.u32 %v305_v17, %v269_v18  ;;  %v303_v23 = vld [vmem:[#allocation5 + $0x34] sm:$0xf] }
  0x15   :  { %v261_v24 = vld [vmem:[#allocation5 + $0x38] sm:$0xf0]  ;;  %v268_v25 = vor.u32 %v306_v21, %v267_v20  ;;  %v259_v26 = vld [vmem:[#allocation5 + $0x30] sm:$0xf]  ;;  %v304_v27 = vld [vmem:[#allocation5 + $0x34] sm:$0xf0] }
  0x16   :  { %180 = vmatpush.bf16.msra.mxu1 %v288_v9  ;;  %v264_v28 = vor.u32 %v303_v23, %v261_v24  ;;  %v301_v29 = vld [vmem:[#allocation5 + $0x24] sm:$0xf]  ;;  %v253_v30 = vld [vmem:[#allocation5 + $0x28] sm:$0xf0]  ;;  %v260_v31 = vor.u32 %v304_v27, %v259_v26  ;;  %v251_v32 = vld [vmem:[#allocation5 + $0x20] sm:$0xf] }
  0x17   :  { %v302_v33 = vld [vmem:[#allocation5 + $0x24] sm:$0xf0]  ;;  %v256_v34 = vor.u32 %v301_v29, %v253_v30  ;;  %v299_v35 = vld [vmem:[#allocation5 + $0x14] sm:$0xf]  ;;  %v245_v36 = vld [vmem:[#allocation5 + $0x18] sm:$0xf0] }
  0x18   :  { %166 = vmatpush.bf16.msra.mxu0 %v284_v13  ;;  %v252_v37 = vor.u32 %v302_v33, %v251_v32  ;;  %v243_v38 = vld [vmem:[#allocation5 + $0x10] sm:$0xf]  ;;  %v300_v39 = vld [vmem:[#allocation5 + $0x14] sm:$0xf0]  ;;  %v248_v40 = vor.u32 %v299_v35, %v245_v36  ;;  %v297_v41 = vld [vmem:[#allocation5 + $0x4] sm:$0xf] }
  0x19   :  { %v237_v42 = vld [vmem:[#allocation5 + $0x8] sm:$0xf0]  ;;  %v244_v43 = vor.u32 %v300_v39, %v243_v38  ;;  %v235_v44 = vld [vmem:[#allocation5] sm:$0xf]  ;;  %v298_v45 = vld [vmem:[#allocation5 + $0x4] sm:$0xf0] }
  0x1a   :  { %181 = vmatpush.bf16.msra.mxu1 %v280_v16  ;;  %v240_v46 = vor.u32 %v297_v41, %v237_v42  ;;  %v60_v47 = vld [vmem:[#allocation2] sm:$0xff]  ;;  %v61_v48 = vld [vmem:[#allocation2 + $0x8] sm:$0xff]  ;;  %v236_v49 = vor.u32 %v298_v45, %v235_v44  ;;  %v79_v51 = vld [vmem:[#allocation7] sm:$0x3] }
  0x1b   :  { %v62_v50 = vpack.c.bf16 %v61_v48, %v60_v47  ;;  %v82_v52 = vperm.slane %v79_v51, 1  ;;  %v81_v57 = vperm.slane %v79_v51, 0 }
  0x1c   :  { %167 = vmatpush.bf16.msra.mxu0 %v276_v19 }
  0x1e   :  { %182 = vmatpush.bf16.msra.mxu1 %v272_v22 }
  0x20   :  { %168 = vmatpush.bf16.msra.mxu0 %v268_v25 }
  0x22   :  { %183 = vmatpush.bf16.msra.mxu1 %v264_v28 }
  0x24   :  { %169 = vmatpush.bf16.msra.mxu0 %v260_v31 }
  0x26   :  { %184 = vmatpush.bf16.msra.mxu1 %v256_v34 }
  0x28   :  { %170 = vmatpush.bf16.msra.mxu0 %v252_v37 }
  0x2a   :  { %185 = vmatpush.bf16.msra.mxu1 %v248_v40 }
  0x2c   :  { %171 = vmatpush.bf16.msra.mxu0 %v244_v43 }
  0x2e   :  { %186 = vmatpush.bf16.msra.mxu1 %v240_v46 }
  0x30   :  { %172 = vmatpush.bf16.msra.mxu0 %v236_v49 }
  0x31   :  { %187 = vmatmul.bf16.vlgmr.msra.gmra.mxu1 %v62_v50 }
  0x33   :  { %173 = vmatmul.bf16.vlgmr.msra.gmra.mxu0 %v62_v50 }
  0xae   :  { %v188_v53 = vpop.f32.mrf.mxu1 }
  0xaf   :  { %v189_v54 = vadd.f32 %v188_v53, %v82_v52 }
  0xb0   :  { %v174_v58 = vpop.f32.mrf.mxu0 }
  0xb1   :  { %v195_v55 = vsub.f32 0.0, %v189_v54  ;;  %v175_v61 = vadd.f32 %v174_v58, %v81_v57 }
  0xb3   :  { %v197_v56 = vmul.f32 1.442695, %v195_v55  ;;  %v193_v2 = vmax.f32 %v175_v61, 0.0 }
  0xb5   :  { %319 = vpow2.f32 %v197_v56  ;;  %v205_v4 = vsub.f32 %v193_v2, %v60_v47 }
  0xb6   :  { %v190_v59 = vpop.f32.mrf.mxu1 }
  0xb7   :  { %v191_v60 = vadd.f32 %v190_v59, %v82_v52 }
  0xb8   :  { %v176_v3 = vpop.f32.mrf.mxu0 }
  0xb9   :  { %v196_v62 = vsub.f32 0.0, %v191_v60  ;;  %v177_v6 = vadd.f32 %v176_v3, %v81_v57 }
  0xbb   :  { %v320_v63 = vpop.eup %319  ;;  %v199_v0 = vmul.f32 1.442695, %v196_v62  ;;  %v194_v11 = vmax.f32 %v177_v6, 0.0 }
  0xbc   :  { %v201_v1 = vadd.f32 1.0, %v320_v63 }
  0xbd   :  { %321 = vpow2.f32 %v199_v0  ;;  %v206_v12 = vsub.f32 %v194_v11, %v61_v48 }
  0xbe   :  { %323 = vrcp.f32 %v201_v1 }
  0xc3   :  { %v322_v5 = vpop.eup %321 }
  0xc4   :  { %v324_v7 = vpop.eup %323  ;;  %v202_v8 = vadd.f32 1.0, %v322_v5 }
  0xc5   :  { %v207_v9 = vmul.f32 %v324_v7, %v205_v4 }
  0xc6   :  { %325 = vrcp.f32 %v202_v8 }
  0xc7   :  { %v209_v10 = vadd.f32 %v207_v9, %v60_v47 }
  0xc9   :  { %211 = vst [vmem:[#allocation8] sm:$0xff] %v209_v10 }
  0xcc   :  { %v326_v13 = vpop.eup %325 }
  0xcd   :  { %v208_v14 = vmul.f32 %v326_v13, %v206_v12 }
  0xcf   :  { %v210_v15 = vadd.f32 %v208_v14, %v61_v48 }
  0xd1   :  { %212 = vst [vmem:[#allocation8 + $0x8] sm:$0xff] %v210_v15 }
  0xd2   :  { %216 = vsyncadd [#allocation4], 128  ;;  %s219_s28 = sshll.u32 %s479_s3, 4  ;;  %s434_s29 = smov [#allocation8]   ;;  %s220_s28 = int_to_ptr.hbm [resolvable:$true] %s219_s28 }
  0xd3   :  { %s217_s30 = sshll.u32 %s434_s29, 4  ;;  %s218_s30 = int_to_ptr.vmem [resolvable:$true] %s217_s30 }
  0xd4   :  { %225 = dma.vmem_to_hbm [thread:$0]  %s218_s30, 128, %s220_s28, [#allocation4], %s430_s20, %s430_s20, %s431_s21  }
  0xd5   :  { %427 = dma.done.wait [#allocation4], 256  }
  0xd6   :  { %428 = vsyncadd [#allocation4], 4294967040 }
  0xd7   :  { %230 = vsyncpa [#allocation3], 1 }
  0xd8   :  { %231 = vsyncpa [#allocation6], 1 }
  0xd9   :  { %232 = vsyncpa [#allocation4], 1 }

</bundles_post_ra>
